<compile_context>
chip_gen: v7x
topology: tpu7x:2x2x1
jax: 0.10.0
libtpu: 0.0.40
codegen_flags: <defaults>
</compile_context>

<pallas_src>
import functools

import jax
import jax.numpy as jnp
from jax import lax
from jax.experimental import pallas as pl
from jax.experimental.pallas import tpu as pltpu

_MIB = 1024 * 1024
_SEQ_SUB = 64   # max sequence rows converted/summed per in-kernel sub-slice


def _vmem_budget_and_limit():
    """Per-generation VMEM knobs: (double-buffered tile budget, vmem_limit_bytes)."""
    cap = None
    try:
        cap = getattr(pltpu.get_tpu_info(), "vmem_capacity_bytes", None)
    except Exception:
        cap = None
    if not cap or cap <= 0:
        cap = 64 * _MIB                               # conservative: v7x-class 64 MiB
    # 128-MiB parts (v5e/v6e) -> ~104/96 MiB; 64-MiB parts (v7x) -> ~40/32 MiB.
    limit = min(max(cap - 24 * _MIB, 32 * _MIB), 112 * _MIB)
    budget = max(limit - 8 * _MIB, 24 * _MIB)
    return budget, limit


def _tensorcores_per_chip():
    """Best-effort TensorCore count per chip (v7x: 2, v5e/v6e: 1)."""
    try:
        info = pltpu.get_tpu_info()
        for name in ("num_cores", "core_count", "num_tensorcores", "cores_per_chip"):
            v = getattr(info, name, None)
            if isinstance(v, int) and v > 0:
                return v
    except Exception:
        pass
    try:
        kind = jax.devices()[0].device_kind.lower()
        if "v7" in kind or "7x" in kind:
            return 2
    except Exception:
        pass
    return 1


def _fc1_partial_kernel(logits_ref, w1_ref, out_ref, *, v_total, mask_tail, seq_sub):
    """Grid = (sequence splits [parallel], vocab chunks [arbitrary/reduction]).

    Per (s, k) step:  out[s] += sum_over_seq_slice(logits_chunk) @ W1_chunk
    The 1/S scale, +b1, ReLU, fc2 and sigmoid are a tiny JAX finalize on the
    partial accumulators (so any batch size engages both v7x TensorCores).
    """
    k = pl.program_id(1)

    @pl.when(k == 0)
    def _():
        out_ref[...] = jnp.zeros_like(out_ref)

    b, tile_s, tv = logits_ref.shape

    # Sequence sum with f32 accumulation, converting (e.g. bf16 -> f32) only one
    # sublane-aligned sub-slice at a time: no full-chunk f32 temporary.
    pooled = jnp.zeros((b, tv), jnp.float32)
    for s0 in range(0, tile_s, seq_sub):
        s1 = min(tile_s, s0 + seq_sub)
        pooled = pooled + jnp.sum(logits_ref[:, s0:s1, :], axis=1, dtype=jnp.float32)

    if mask_tail:
        # Last vocab chunk extends past V: its out-of-range lanes hold undefined
        # data (the big logits tensor is NOT padded). Mask them exactly to zero;
        # W1 is zero-padded host-side so those rows contribute nothing.
        lane = lax.broadcasted_iota(jnp.int32, pooled.shape, 1)
        pooled = jnp.where(lane < (v_total - k * tv), pooled, 0.0)

    # Partial fc1 contraction for this vocab chunk (MXU, f32 accumulate) into the
    # VMEM-resident output block (same block index for every k).
    out_ref[...] += jnp.dot(pooled, w1_ref[...], preferred_element_type=jnp.float32)


def opt_classifier_head(opt_logits, w1, b1, w2, b2, *,
                        tile_v=None, num_seq_splits=None,
                        vmem_budget_bytes=None, vmem_limit_bytes=None):
    """opt_logits: (B, S, V) f32/bf16 (pass bf16 straight from the LM head if possible);
    w1: (V, 32); b1: (1, 32); w2: (32, 1); b2: (1, 1)   (w1/w2 are the transposes of
    the PyTorch nn.Linear weights).

    Returns sigmoid(relu(mean(opt_logits, axis=1) @ w1 + b1) @ w2 + b2), shape (B, 1), f32.
    """
    B, S, V = opt_logits.shape
    Vw, H = w1.shape
    assert Vw == V, (Vw, V)
    assert b1.shape == (1, H) and w2.shape == (H, 1) and b2.shape == (1, 1)

    if vmem_budget_bytes is None or vmem_limit_bytes is None:
        auto_budget, auto_limit = _vmem_budget_and_limit()
        vmem_budget_bytes = vmem_budget_bytes or auto_budget
        vmem_limit_bytes = vmem_limit_bytes or auto_limit

    logit_bytes = opt_logits.dtype.itemsize

    # ---- sequence split: a "parallel" grid axis so v7x's two TensorCores both stream.
    #      On single-TC chips (v5e/v6e) it stays 1 (no extra grid steps / W1 re-streams).
    if num_seq_splits is None:
        num_seq_splits = 2 if (_tensorcores_per_chip() >= 2 and S % 32 == 0) else 1
    n_s = int(num_seq_splits)
    assert n_s >= 1 and S % n_s == 0, (S, n_s)
    tile_s = S // n_s
    sub_align = 16 if logit_bytes < 4 else 8
    assert tile_s == S or tile_s % sub_align == 0, (tile_s, sub_align)
    seq_sub = min(tile_s, _SEQ_SUB)

    # ---- vocab (reduction) tile, sized against a double-buffered VMEM budget ----
    def vmem_cost(tv):
        logits_chunk = B * tile_s * tv * logit_bytes     # pipelined logits tile
        w1_chunk = tv * H * 4                            # pipelined fc1-weight tile
        sub_temp = B * seq_sub * tv * 4                  # f32 temp of one seq sub-slice
        pooled_tmp = 2 * B * tv * 4                      # pooled sum (+ masked copy)
        out_resident = 2 * B * H * 4                     # resident output block
        return (2 * (logits_chunk + w1_chunk) + sub_temp + pooled_tmp
                + out_resident + (1 << 16))

    if tile_v is None:
        if vmem_cost(V) <= vmem_budget_bytes:
            tile_v = V                      # whole vocab in one step; no masking needed
        else:
            base = vmem_cost(0)
            per_lane = max(1, (vmem_cost(128) - base) // 128)
            tile_v = int((vmem_budget_bytes - base) // per_lane) // 128 * 128
            tile_v = max(128, min(tile_v, ((V + 127) // 128) * 128))
    else:
        assert tile_v == V or tile_v % 128 == 0, "tile_v must be V or a multiple of 128"

    if tile_v >= V:
        tile_v, n_v, mask_tail = V, 1, False
        w1_in = w1
    else:
        n_v = -(-V // tile_v)                            # ceil
        mask_tail = (n_v * tile_v != V)
        # Only W1 (tiny) is padded — never the (B, S, V) logits stream.
        w1_in = jnp.pad(w1, ((0, n_v * tile_v - V), (0, 0))) if mask_tail else w1

    kernel = functools.partial(_fc1_partial_kernel, v_total=V,
                               mask_tail=mask_tail, seq_sub=seq_sub)

    partials = pl.pallas_call(
        kernel,
        out_shape=jax.ShapeDtypeStruct((n_s, B, H), jnp.float32),
        grid_spec=pltpu.PrefetchScalarGridSpec(
            num_scalar_prefetch=0,
            grid=(n_s, n_v),
            in_specs=[
                pl.BlockSpec((B, tile_s, tile_v), lambda s, k: (0, s, k)),  # logits chunk
                pl.BlockSpec((tile_v, H), lambda s, k: (k, 0)),             # W1 chunk
            ],
            out_specs=pl.BlockSpec((None, B, H), lambda s, k: (s, 0, 0)),   # fc1 partials
        ),
        compiler_params=pltpu.CompilerParams(
            dimension_semantics=("parallel", "arbitrary"),   # seq parallel, vocab reduction
            vmem_limit_bytes=int(vmem_limit_bytes),
        ),
    )(opt_logits, w1_in)

    # ---- tiny finalize in plain JAX (B x 32 floats): 1/S scale, bias, ReLU, fc2, sigmoid.
    fc1 = partials.sum(axis=0) * (1.0 / S) + b1
    h = jnp.maximum(fc1, 0.0)
    y = jnp.dot(h, w2, precision=lax.Precision.HIGHEST) + b2
    return jax.nn.sigmoid(y)


def _reference(opt_logits, w1, b1, w2, b2):
    pooled = jnp.mean(opt_logits.astype(jnp.float32), axis=1)
    h = jnp.maximum(jnp.dot(pooled, w1, precision=lax.Precision.HIGHEST) + b1, 0.0)
    y = jnp.dot(h, w2, precision=lax.Precision.HIGHEST) + b2
    return jax.nn.sigmoid(y)


if __name__ == "__main__":
    # Small, deterministic synthetic shapes consistent with the module:
    # batch=2, seq=16, vocab=512 (stands in for pretrained_model.config.vocab_size),
    # hidden=32, output=1.
    B, S, V, H = 2, 16, 512, 32

    key = jax.random.PRNGKey(0)
    k_logits, k_w1, k_b1, k_w2, k_b2 = jax.random.split(key, 5)

    # Stand-in for self.opt(...).logits
    opt_logits = jax.random.normal(k_logits, (B, S, V), dtype=jnp.float32)

    # fc1: nn.Linear(V, 32) -> store transposed weight (V, 32); fc2 likewise (32, 1).
    w1 = jax.random.normal(k_w1, (V, H), dtype=jnp.float32) * 0.02
    b1 = jax.random.normal(k_b1, (1, H), dtype=jnp.float32) * 0.02
    w2 = jax.random.normal(k_w2, (H, 1), dtype=jnp.float32) * 0.02
    b2 = jax.random.normal(k_b2, (1, 1), dtype=jnp.float32) * 0.02

    ref = _reference(opt_logits, w1, b1, w2, b2)

    # 1) Default path: whole vocab fits the budget -> single reduction step;
    #    sequence split auto-gated on TensorCore count.
    out = jax.block_until_ready(opt_classifier_head(opt_logits, w1, b1, w2, b2))
    assert out.shape == (B, 1)
    assert jnp.allclose(out, ref, atol=1e-4, rtol=1e-4), (out, ref)

    # 2) Forced small vocab tile: multi-step reduction accumulator path (V % tile_v == 0).
    out_t = jax.block_until_ready(
        opt_classifier_head(opt_logits, w1, b1, w2, b2, tile_v=128))
    assert jnp.allclose(out_t, ref, atol=1e-4, rtol=1e-4), (out_t, ref)

    # 3) bf16 logits + ragged vocab (V % 128 != 0): exercises the in-kernel tail-lane
    #    masking path (no padding of the big logits tensor) and f32 accumulation.
    V_r = 500
    logits_bf16 = opt_logits[:, :, :V_r].astype(jnp.bfloat16)
    w1_r = w1[:V_r]
    ref_r = _reference(logits_bf16, w1_r, b1, w2, b2)
    out_r = jax.block_until_ready(
        opt_classifier_head(logits_bf16, w1_r, b1, w2, b2, tile_v=128))
    assert jnp.allclose(out_r, ref_r, atol=1e-4, rtol=1e-4), (out_r, ref_r)

    # 4) Forced 2-way sequence split: exercises the multi-TensorCore partials path
    #    (runs correctly on single-TC chips too, just as a serial loop).
    out_s = jax.block_until_ready(
        opt_classifier_head(opt_logits, w1, b1, w2, b2, tile_v=128, num_seq_splits=2))
    assert jnp.allclose(out_s, ref, atol=1e-4, rtol=1e-4), (out_s, ref)

    print("KERNEL_OK")
</pallas_src>

<mosaic_0001>
module attributes {stable_mosaic.version = 11 : i64} {
  func.func @_fc1_partial_kernel(%arg0: i32, %arg1: i32, %arg2: memref<2x16x512xf32, #tpu.memory_space<vmem>>, %arg3: memref<512x32xf32, #tpu.memory_space<vmem>>, %arg4: memref<1x2x32xf32, #tpu.memory_space<vmem>>) attributes {dimension_semantics = [#tpu.dimension_semantics<parallel>, #tpu.dimension_semantics<arbitrary>], iteration_bounds = array<i64: 1, 1>, scalar_prefetch = 0 : i64, scratch_operands = 0 : i64, tpu.core_type = #tpu.core_type<tc>, window_params = [{transform_indices = @transform_0, window_bounds = array<i64: 2, 16, 512>}, {transform_indices = @transform_1, window_bounds = array<i64: 512, 32>}, {transform_indices = @transform_2, window_bounds = array<i64: 1, 2, 32>}]} {
    %c0_i32 = arith.constant 0 : i32
    %0 = arith.cmpi eq, %arg1, %c0_i32 : i32
    %1 = arith.extui %0 : i1 to i32
    %c0_i32_0 = arith.constant 0 : i32
    %2 = arith.cmpi ne, %1, %c0_i32_0 : i32
    scf.if %2 {
      %cst_13 = arith.constant 0.000000e+00 : f32
      %15 = vector.broadcast %cst_13 : f32 to vector<2x32xf32>
      %c0_14 = arith.constant 0 : index
      %c0_15 = arith.constant 0 : index
      %c0_16 = arith.constant 0 : index
      %16 = vector.load %arg4[%c0_14, %c0_15, %c0_16] : memref<1x2x32xf32, #tpu.memory_space<vmem>>, vector<1x2x32xf32>
      %17 = vector.shape_cast %16 : vector<1x2x32xf32> to vector<2x32xf32>
      %18 = vector.shape_cast %15 : vector<2x32xf32> to vector<1x2x32xf32>
      tpu.vector_store %arg4[%c0_14, %c0_15, %c0_16], %18 {strides = array<i32>} : memref<1x2x32xf32, #tpu.memory_space<vmem>>, vector<1x2x32xf32>,
    } else {
    }
    %cst = arith.constant 0.000000e+00 : f32
    %3 = vector.broadcast %cst : f32 to vector<2x512xf32>
    %c0 = arith.constant 0 : index
    %c0_1 = arith.constant 0 : index
    %c0_2 = arith.constant 0 : index
    %4 = vector.load %arg2[%c0, %c0_1, %c0_2] : memref<2x16x512xf32, #tpu.memory_space<vmem>>, vector<2x16x512xf32>
    %cst_3 = arith.constant dense<0.000000e+00> : vector<2x512xf32>
    %5 = vector.multi_reduction <add>, %4, %cst_3 [1] : vector<2x16x512xf32> to vector<2x512xf32>
    %6 = arith.addf %3, %5 : vector<2x512xf32>
    %c0_4 = arith.constant 0 : index
    %c0_5 = arith.constant 0 : index
    %c0_6 = arith.constant 0 : index
    %7 = vector.load %arg4[%c0_4, %c0_5, %c0_6] : memref<1x2x32xf32, #tpu.memory_space<vmem>>, vector<1x2x32xf32>
    %8 = vector.shape_cast %7 : vector<1x2x32xf32> to vector<2x32xf32>
    %c0_7 = arith.constant 0 : index
    %c0_8 = arith.constant 0 : index
    %9 = vector.load %arg3[%c0_7, %c0_8] : memref<512x32xf32, #tpu.memory_space<vmem>>, vector<512x32xf32>
    %cst_9 = arith.constant dense<0.000000e+00> : vector<2x32xf32>
    %10 = tpu.matmul %6, %9, %cst_9 {dimension_numbers = #tpu.dot_dimension_numbers<[1], [0], [0], [1], [0, 0, 1, 1], [], []>} : vector<2x512xf32>, vector<512x32xf32>, vector<2x32xf32> -> vector<2x32xf32>
    %11 = arith.addf %8, %10 : vector<2x32xf32>
    %c0_10 = arith.constant 0 : index
    %c0_11 = arith.constant 0 : index
    %c0_12 = arith.constant 0 : index
    %12 = vector.load %arg4[%c0_10, %c0_11, %c0_12] : memref<1x2x32xf32, #tpu.memory_space<vmem>>, vector<1x2x32xf32>
    %13 = vector.shape_cast %12 : vector<1x2x32xf32> to vector<2x32xf32>
    %14 = vector.shape_cast %11 : vector<2x32xf32> to vector<1x2x32xf32>
    tpu.vector_store %arg4[%c0_10, %c0_11, %c0_12], %14 {strides = array<i32>} : memref<1x2x32xf32, #tpu.memory_space<vmem>>, vector<1x2x32xf32>,
    return
  }
  func.func @transform_0(%arg0: i32, %arg1: i32) -> (i32, i32, i32) {
    %c0_i32 = arith.constant 0 : i32
    %c0_i32_0 = arith.constant 0 : i32
    return %c0_i32, %arg0, %arg1 : i32, i32, i32
  }
  func.func @transform_1(%arg0: i32, %arg1: i32) -> (i32, i32) {
    %c0_i32 = arith.constant 0 : i32
    %c0_i32_0 = arith.constant 0 : i32
    return %arg1, %c0_i32 : i32, i32
  }
  func.func @transform_2(%arg0: i32, %arg1: i32) -> (i32, i32, i32) {
    %c0_i32 = arith.constant 0 : i32
    %c0_i32_0 = arith.constant 0 : i32
    %c0_i32_1 = arith.constant 0 : i32
    return %arg0, %c0_i32, %c0_i32_0 : i32, i32, i32
  }
}

</mosaic_0001>

<bundles_post_ra>
// kernel: tpu_custom_call.1
= control target key start
LH: loop header
LB: loop body
LE: loop exit
PB: predicated region body
PF: predicated region fallthrough
CT: control target
= control target key end

     0   :  { %vm171_vm0 = vcmask 1041409   ;;  %s803_s0 = inlined_call_operand.vmem [shape: f32[2,16,512], index: 0, kind: input, shape index: {}]   ;;  %s804_s1 = inlined_call_operand.vmem [shape: f32[512,32], index: 1, kind: input, shape index: {}]   ;;  %s805_s2 = inlined_call_operand.hbm [shape: f32[1,2,32], index: 2, kind: output, shape index: {}]  }
   0x1   :  { %v115_v0 = vld [vmem:[%s804_s1 + $0x80] sm:$0xff]  ;;  %v116_v1 = vld [vmem:[%s804_s1 + $0x88] sm:$0xff]  ;;  %v117_v11 = vld [vmem:[%s804_s1 + $0x90] sm:$0xff] }
   0x2   :  { %v147_v2 = vld [vmem:[%s804_s1 + $0x180] sm:$0xff]  ;;  %v407_v3 = vpack.c.bf16 %v116_v1, %v115_v0  ;;  %v148_v4 = vld [vmem:[%s804_s1 + $0x188] sm:$0xff]  ;;  %v118_v13 = vld [vmem:[%s804_s1 + $0x98] sm:$0xff] }
   0x3   :  { %v99_v5 = vld [vmem:[%s804_s1] sm:$0xff]  ;;  %v100_v6 = vld [vmem:[%s804_s1 + $0x8] sm:$0xff]  ;;  %v439_v7 = vpack.c.bf16 %v148_v4, %v147_v2  ;;  %v149_v14 = vld [vmem:[%s804_s1 + $0x190] sm:$0xff]  ;;  %v411_v16 = vpack.c.bf16 %v118_v13, %v117_v11 }
   0x4   :  { %v409_v8 = vpack.c.bf16 %v100_v6, %v99_v5  ;;  %v131_v9 = vld [vmem:[%s804_s1 + $0x100] sm:$0xff]  ;;  %v132_v10 = vld [vmem:[%s804_s1 + $0x108] sm:$0xff]  ;;  %408 = vmatprep.subr.bf16.mxu0 %v407_v3  ;;  %v150_v15 = vld [vmem:[%s804_s1 + $0x198] sm:$0xff] }
   0x5   :  { %v441_v12 = vpack.c.bf16 %v132_v10, %v131_v9  ;;  %440 = vmatprep.subr.bf16.mxu1 %v439_v7  ;;  %v443_v17 = vpack.c.bf16 %v150_v15, %v149_v14  ;;  %v101_v18 = vld [vmem:[%s804_s1 + $0x10] sm:$0xff]  ;;  %v102_v19 = vld [vmem:[%s804_s1 + $0x18] sm:$0xff]  ;;  %v119_v23 = vld [vmem:[%s804_s1 + $0xa0] sm:$0xff] }
   0x6   :  { %410 = vmatpush3.bf16.msra.mxu0 %v409_v8  ;;  %v133_v20 = vld [vmem:[%s804_s1 + $0x110] sm:$0xff]  ;;  %v413_v21 = vpack.c.bf16 %v102_v19, %v101_v18  ;;  %v134_v22 = vld [vmem:[%s804_s1 + $0x118] sm:$0xff]  ;;  %v120_v24 = vld [vmem:[%s804_s1 + $0xa8] sm:$0xff] }
   0x7   :  { %442 = vmatpush3.bf16.msra.mxu1 %v441_v12  ;;  %412 = vmatprep.subr.bf16.mxu0 %v411_v16  ;;  %v445_v25 = vpack.c.bf16 %v134_v22, %v133_v20  ;;  %v415_v26 = vpack.c.bf16 %v120_v24, %v119_v23  ;;  %v151_v27 = vld [vmem:[%s804_s1 + $0x1a0] sm:$0xff]  ;;  %v152_v28 = vld [vmem:[%s804_s1 + $0x1a8] sm:$0xff]  ;;  %v121_v35 = vld [vmem:[%s804_s1 + $0xb0] sm:$0xff] }
   0x8   :  { %444 = vmatprep.subr.bf16.mxu1 %v443_v17  ;;  %v103_v29 = vld [vmem:[%s804_s1 + $0x20] sm:$0xff]  ;;  %v447_v30 = vpack.c.bf16 %v152_v28, %v151_v27  ;;  %v104_v31 = vld [vmem:[%s804_s1 + $0x28] sm:$0xff]  ;;  %v122_v36 = vld [vmem:[%s804_s1 + $0xb8] sm:$0xff] }
   0x9   :  { %v135_v32 = vld [vmem:[%s804_s1 + $0x120] sm:$0xff]  ;;  %v136_v33 = vld [vmem:[%s804_s1 + $0x128] sm:$0xff]  ;;  %v417_v34 = vpack.c.bf16 %v104_v31, %v103_v29  ;;  %v153_v37 = vld [vmem:[%s804_s1 + $0x1b0] sm:$0xff]  ;;  %v419_v39 = vpack.c.bf16 %v122_v36, %v121_v35 }
   0xa   :  { %414 = vmatpush3.bf16.msra.mxu0 %v413_v21  ;;  %v449_v38 = vpack.c.bf16 %v136_v33, %v135_v32  ;;  %v154_v40 = vld [vmem:[%s804_s1 + $0x1b8] sm:$0xff]  ;;  %v105_v41 = vld [vmem:[%s804_s1 + $0x30] sm:$0xff]  ;;  %v123_v46 = vld [vmem:[%s804_s1 + $0xc0] sm:$0xff] }
   0xb   :  { %446 = vmatpush3.bf16.msra.mxu1 %v445_v25  ;;  %416 = vmatprep.subr.bf16.mxu0 %v415_v26  ;;  %v106_v42 = vld [vmem:[%s804_s1 + $0x38] sm:$0xff]  ;;  %v451_v43 = vpack.c.bf16 %v154_v40, %v153_v37  ;;  %v137_v44 = vld [vmem:[%s804_s1 + $0x130] sm:$0xff]  ;;  %v124_v47 = vld [vmem:[%s804_s1 + $0xc8] sm:$0xff] }
   0xc   :  { %448 = vmatprep.subr.bf16.mxu1 %v447_v30  ;;  %v138_v45 = vld [vmem:[%s804_s1 + $0x138] sm:$0xff]  ;;  %v155_v48 = vld [vmem:[%s804_s1 + $0x1c0] sm:$0xff]  ;;  %v156_v49 = vld [vmem:[%s804_s1 + $0x1c8] sm:$0xff]  ;;  %v421_v50 = vpack.c.bf16 %v106_v42, %v105_v41  ;;  %v423_v53 = vpack.c.bf16 %v124_v47, %v123_v46 }
   0xd   :  { %v107_v51 = vld [vmem:[%s804_s1 + $0x40] sm:$0xff]  ;;  %v453_v52 = vpack.c.bf16 %v138_v45, %v137_v44  ;;  %v108_v54 = vld [vmem:[%s804_s1 + $0x48] sm:$0xff]  ;;  %v455_v57 = vpack.c.bf16 %v156_v49, %v155_v48  ;;  %v125_v58 = vld [vmem:[%s804_s1 + $0xd0] sm:$0xff] }
   0xe   :  { %418 = vmatpush3.bf16.msra.mxu0 %v417_v34  ;;  %v139_v55 = vld [vmem:[%s804_s1 + $0x140] sm:$0xff]  ;;  %v140_v56 = vld [vmem:[%s804_s1 + $0x148] sm:$0xff]  ;;  %v126_v59 = vld [vmem:[%s804_s1 + $0xd8] sm:$0xff]  ;;  %v425_v0 = vpack.c.bf16 %v108_v54, %v107_v51 }
   0xf   :  { %450 = vmatpush3.bf16.msra.mxu1 %v449_v38  ;;  %420 = vmatprep.subr.bf16.mxu0 %v419_v39  ;;  %v157_v60 = vld [vmem:[%s804_s1 + $0x1d0] sm:$0xff]  ;;  %v158_v61 = vld [vmem:[%s804_s1 + $0x1d8] sm:$0xff]  ;;  %v127_v3 = vld [vmem:[%s804_s1 + $0xe0] sm:$0xff]  ;;  %v457_v4 = vpack.c.bf16 %v140_v56, %v139_v55  ;;  %v427_v5 = vpack.c.bf16 %v126_v59, %v125_v58 }
  0x10   :  { %452 = vmatprep.subr.bf16.mxu1 %v451_v43  ;;  %v109_v62 = vld [vmem:[%s804_s1 + $0x50] sm:$0xff]  ;;  %v110_v63 = vld [vmem:[%s804_s1 + $0x58] sm:$0xff]  ;;  %v128_v6 = vld [vmem:[%s804_s1 + $0xe8] sm:$0xff]  ;;  %v459_v9 = vpack.c.bf16 %v158_v61, %v157_v60 }
  0x11   :  { %v141_v1 = vld [vmem:[%s804_s1 + $0x150] sm:$0xff]  ;;  %v142_v2 = vld [vmem:[%s804_s1 + $0x158] sm:$0xff]  ;;  %v159_v7 = vld [vmem:[%s804_s1 + $0x1e0] sm:$0xff]  ;;  %v429_v18 = vpack.c.bf16 %v110_v63, %v109_v62  ;;  %v431_v23 = vpack.c.bf16 %v128_v6, %v127_v3 }
  0x12   :  { %422 = vmatpush3.bf16.msra.mxu0 %v421_v50  ;;  %v160_v8 = vld [vmem:[%s804_s1 + $0x1e8] sm:$0xff]  ;;  %v673_v10 = vld [vmem:[%s804_s1 + $0x60] sm:$0xff]  ;;  %v691_v14 = vld [vmem:[%s804_s1 + $0xf0] sm:$0xff]  ;;  %v461_v22 = vpack.c.bf16 %v142_v2, %v141_v1 }
  0x13   :  { %454 = vmatpush3.bf16.msra.mxu1 %v453_v52  ;;  %424 = vmatprep.subr.bf16.mxu0 %v423_v53  ;;  %v112_v11 = vld [vmem:[%s804_s1 + $0x68] sm:$0xff]  ;;  %v681_v12 = vld [vmem:[%s804_s1 + $0x160] sm:$0xff]  ;;  %v696_v15 = vld [vmem:[%s804_s1 + $0xf8] sm:$0xff]  ;;  %v463_v27 = vpack.c.bf16 %v160_v8, %v159_v7 }
  0x14   :  { %456 = vmatprep.subr.bf16.mxu1 %v455_v57  ;;  %v686_v13 = vld [vmem:[%s804_s1 + $0x168] sm:$0xff]  ;;  %v701_v16 = vld [vmem:[%s804_s1 + $0x1f0] sm:$0xff]  ;;  %v706_v17 = vld [vmem:[%s804_s1 + $0x1f8] sm:$0xff]  ;;  %v433_v32 = vpack.c.bf16 %v112_v11, %v673_v10  ;;  %v435_v34 = vpack.c.bf16 %v696_v15, %v691_v14 }
  0x15   :  { %v711_v19 = vld [vmem:[%s804_s1 + $0x70] sm:$0xff]  ;;  %v716_v20 = vld [vmem:[%s804_s1 + $0x78] sm:$0xff]  ;;  %v19_v25 = vld [vmem:[%s803_s0 + $0x8] sm:$0xff]  ;;  %v465_v33 = vpack.c.bf16 %v686_v13, %v681_v12  ;;  %v467_v39 = vpack.c.bf16 %v706_v17, %v701_v16 }
  0x16   :  { %426 = vmatpush3.bf16.msra.mxu0 %v425_v0  ;;  %v721_v21 = vld [vmem:[%s804_s1 + $0x170] sm:$0xff]  ;;  %v726_v24 = vld [vmem:[%s804_s1 + $0x178] sm:$0xff]  ;;  %v23_v26 = vld [vmem:[%s803_s0 + $0x28] sm:$0xff]  ;;  %v437_v46 = vpack.c.bf16 %v716_v20, %v711_v19 }
  0x17   :  { %458 = vmatpush3.bf16.msra.mxu1 %v457_v4  ;;  %428 = vmatprep.subr.bf16.mxu0 %v427_v5  ;;  %v27_v28 = vld [vmem:[%s803_s0 + $0x48] sm:$0xff]  ;;  %v41_v30 = vadd.f32 %v23_v26, %v19_v25  ;;  %v21_v31 = vld [vmem:[%s803_s0 + $0x18] sm:$0xff]  ;;  %v18_v43 = vld [vmem:[%s803_s0] sm:$0xff]  ;;  %v469_v47 = vpack.c.bf16 %v726_v24, %v721_v21 }
  0x18   :  { %460 = vmatprep.subr.bf16.mxu1 %v459_v9  ;;  %v31_v29 = vld [vmem:[%s803_s0 + $0x68] sm:$0xff]  ;;  %v25_v36 = vld [vmem:[%s803_s0 + $0x38] sm:$0xff]  ;;  %v22_v44 = vld [vmem:[%s803_s0 + $0x20] sm:$0xff] }
  0x19   :  { %v69_v35 = vadd.f32 %v31_v29, %v27_v28  ;;  %v29_v37 = vld [vmem:[%s803_s0 + $0x58] sm:$0xff]  ;;  %v42_v40 = vrot.slane %v41_v30, 4  ;;  %v55_v41 = vadd.f32 %v25_v36, %v21_v31  ;;  %v26_v45 = vld [vmem:[%s803_s0 + $0x40] sm:$0xff]  ;;  %v34_v50 = vadd.f32 %v22_v44, %v18_v43  ;;  %v20_v51 = vld [vmem:[%s803_s0 + $0x10] sm:$0xff] }
  0x1a   :  { %v33_v38 = vld [vmem:[%s803_s0 + $0x78] sm:$0xff]  ;;  %430 = vmatpush3.bf16.msra.mxu0 %v429_v18  ;;  %v30_v49 = vld [vmem:[%s803_s0 + $0x60] sm:$0xff]  ;;  %v24_v52 = vld [vmem:[%s803_s0 + $0x30] sm:$0xff] }
  0x1b   :  { %v83_v42 = vadd.f32 %v33_v38, %v29_v37  ;;  %462 = vmatpush3.bf16.msra.mxu1 %v461_v22  ;;  %432 = vmatprep.subr.bf16.mxu0 %v431_v23  ;;  %v70_v48 = vrot.slane %v69_v35, 4  ;;  %v43_v53 = vadd.f32 %v42_v40, %v41_v30  ;;  %v56_v54 = vrot.slane %v55_v41, 4  ;;  %v28_v57 = vld [vmem:[%s803_s0 + $0x50] sm:$0xff] }
  0x1c   :  { %464 = vmatprep.subr.bf16.mxu1 %v463_v27  ;;  %v62_v56 = vadd.f32 %v30_v49, %v26_v45  ;;  %v32_v58 = vld [vmem:[%s803_s0 + $0x70] sm:$0xff] }
  0x1d   :  { %v84_v55 = vrot.slane %v83_v42, 4 }
  0x1e   :  { %7 = vsyncpa [#allocation3], 0  ;;  %v71_v59 = vadd.f32 %v70_v48, %v69_v35  ;;  %v35_v60 = vrot.slane %v34_v50, 4  ;;  %v48_v61 = vadd.f32 %v24_v52, %v20_v51  ;;  %v76_v62 = vadd.f32 %v32_v58, %v28_v57  ;;  %434 = vmatpush3.bf16.msra.mxu0 %v433_v32  ;;  %s498_s0 = smov [#allocation2]  }
  0x1f   :  { %v44_v63 = vrot.slane %v43_v53, 2  ;;  %v57_v0 = vadd.f32 %v56_v54, %v55_v41  ;;  %v85_v1 = vadd.f32 %v84_v55, %v83_v42  ;;  %v63_v2 = vrot.slane %v62_v56, 4  ;;  %466 = vmatpush3.bf16.msra.mxu1 %v465_v33  ;;  %436 = vmatprep.subr.bf16.mxu0 %v435_v34  ;;  %s329_s28 = sshll.u32 %s498_s0, 4  ;;  %s330_s28 = int_to_ptr.vmem [resolvable:$true] %s329_s28 }
  0x20   :  { %v72_v3 = vrot.slane %v71_v59, 2  ;;  %v36_v4 = vadd.f32 %v35_v60, %v34_v50  ;;  %v49_v5 = vrot.slane %v48_v61, 4  ;;  %v77_v6 = vrot.slane %v76_v62, 4  ;;  %468 = vmatprep.subr.bf16.mxu1 %v467_v39  ;;  %s473_s29 = scalar_lea.vmem %s330_s28, 32  ;;  %p478_p1 = scmp.lt.s32.totalorder %s330_s28, %s330_s28 }
  0x21   :  { %v45_v7 = vadd.f32 %v44_v63, %v43_v53  ;;  %v58_v8 = vrot.slane %v57_v0, 2  ;;  %v86_v9 = vrot.slane %v85_v1, 2  ;;  %v64_v10 = vadd.f32 %v63_v2, %v62_v56  ;;  %p474_p0 = scmp.ne.s32.totalorder %s330_s28, %s473_s29  ;;  %p479_p2 = scmp.lt.s32.totalorder %s473_s29, %s473_s29 }
  0x22   :  { %v73_v11 = vadd.f32 %v72_v3, %v71_v59  ;;  %v37_v12 = vrot.slane %v36_v4, 2  ;;  %v50_v13 = vadd.f32 %v49_v5, %v48_v61  ;;  %v78_v14 = vadd.f32 %v77_v6, %v76_v62  ;;  %438 = vmatpush3.bf16.msra.mxu0 %v437_v46 }
  0x23   :  { %v46_v15 = vrot.slane %v45_v7, 1  ;;  %v59_v16 = vadd.f32 %v58_v8, %v57_v0  ;;  %v87_v17 = vadd.f32 %v86_v9, %v85_v1  ;;  %v65_v18 = vrot.slane %v64_v10, 2  ;;  %470 = vmatpush3.bf16.msra.mxu1 %v469_v47  ;;  %p480_p3 = por %p479_p2, %p478_p1 }
  0x24   :  { %v74_v19 = vrot.slane %v73_v11, 1  ;;  %v38_v20 = vadd.f32 %v37_v12, %v36_v4  ;;  %v51_v21 = vrot.slane %v50_v13, 2  ;;  %v79_v22 = vrot.slane %v78_v14, 2 }
  0x25   :  { %v47_v23 = vadd.f32 %v46_v15, %v45_v7  ;;  %v60_v24 = vrot.slane %v59_v16, 1  ;;  %v88_v25 = vrot.slane %v87_v17, 1  ;;  %v66_v26 = vadd.f32 %v65_v18, %v64_v10  ;;  %p481_p4 = pnand %p480_p3, %p474_p0 }
  0x26   :  { %v75_v27 = vadd.f32 %v74_v19, %v73_v11  ;;  %v39_v28 = vrot.slane %v38_v20, 1  ;;  %v52_v29 = vadd.f32 %v51_v21, %v50_v13  ;;  %v80_v30 = vadd.f32 %v79_v22, %v78_v14 }
  0x27   :  { %v61_v31 = vadd.f32 %v60_v24, %v59_v16  ;;  %v89_v32 = vadd.f32 %v88_v25, %v87_v17  ;;  %v67_v33 = vrot.slane %v66_v26, 1  ;;  %vm16_vm1 = vcmask 254976  }
  0x28   :  { %v173_v34 = vsel %vm171_vm0, %v75_v27, %v47_v23  ;;  %v40_v35 = vadd.f32 %v39_v28, %v38_v20  ;;  %v53_v36 = vrot.slane %v52_v29, 1  ;;  %v81_v37 = vrot.slane %v80_v30, 1 }
  0x29   :  { %244 = vmatprep.mubr.f32.mxu0 %v173_v34  ;;  %v175_v38 = vsel %vm171_vm0, %v89_v32, %v61_v31  ;;  %v68_v39 = vadd.f32 %v67_v33, %v66_v26  ;;  %v497_v44 = vmov 0.0  }
  0x2a   :  { %314 = vmatprep.mubr.f32.mxu1 %v175_v38  ;;  %v54_v40 = vadd.f32 %v53_v36, %v52_v29  ;;  %v82_v41 = vadd.f32 %v81_v37, %v80_v30  ;;  %17 = vst.msk [vmem:[#allocation2] sm:$0x3] %vm16_vm1, %v497_v44 }
  0x2b   :  { %v172_v42 = vsel %vm171_vm0, %v68_v39, %v40_v35 }
  0x2c   :  { %245 = vmatmul.mubr.f32.vlgmr.msra.gmra.mrb[0].mxu0 %v172_v42  ;;  %v174_v43 = vsel %vm171_vm0, %v82_v41, %v54_v40 }
  0x2d   :  { %315 = vmatmul.mubr.f32.vlgmr.msra.gmra.mrb[0].mxu1 %v174_v43 }
  0x31   :  { %v98_v51 = vld [vmem:[#allocation2] sm:$0x3] }
  0xff   :  { %v369_v45 = vpop.f32.mrb[0].mxu0 }
 0x100   :  { %v404_v46 = vpop.f32.mrb[0].mxu1  ;;  %v370_v47 = vpop.f32.mrb[1].mxu0 }
 0x101   :  { %v371_v48 = vadd.f32 %v370_v47, %v369_v45  ;;  %v405_v49 = vpop.f32.mrb[1].mxu1 }
 0x102   :  { %v406_v50 = vadd.f32 %v405_v49, %v404_v46 }
 0x104   :  { %v317_v52 = vadd.f32 %v406_v50, %v371_v48 }
 0x106   :  { %v320_v53 = vadd.f32 %v317_v52, %v98_v51 }
 0x108   :  { %322 = vst.msk [vmem:[#allocation2] sm:$0x3] %vm16_vm1, %v320_v53 }
 0x109   :  { %484 = shalt.err (!%p481_p4)
}
 0x10a   :  { %s485_s4 = scalar_lea.hbm %s805_s2, 32 }
 0x10b   :  { %p486_p5 = scmp.ne.s32.totalorder %s805_s2, %s485_s4  ;;  %p489_p6 = scmp.lt.u32.totalorder %s485_s4, %s805_s2 }
 0x10d   :  { %p491_p7 = pnand %p489_p6, %p486_p5 }
 0x10f   :  { %494 = shalt.err (!%p491_p7)
}
 0x110   :  { %332 = dma.vmem_to_hbm [thread:$0]  %s330_s28, 32, %s805_s2, [#allocation3]  }
 0x111   :  { %495 = dma.done.wait [#allocation3], 32  }
 0x112   :  { %496 = vsyncadd [#allocation3], 4294967264 }
 0x113   :  { %336 = vsyncpa [#allocation3], 1 }

</bundles_post_ra>
